<compile_context>
chip_gen: v7x
topology: tpu7x:2x2x1
jax: 0.10.0
libtpu: 0.0.40
codegen_flags: <defaults>
</compile_context>

<pallas_src>
from functools import partial

import jax
import jax.numpy as jnp
from jax.experimental import pallas as pl
from jax.experimental.pallas import tpu as pltpu


def _dice_sums_kernel(preds_ref, tgt_ref, out_ref, acc_ref, *,
                      ignore_index, hw, tile_pix, tiles_per_split):
    s = pl.program_id(0)                        # core-split index ("parallel")
    i = pl.program_id(2)                        # pixel tile within split ("arbitrary")
    gtile = s * tiles_per_split + i             # global pixel-tile index

    @pl.when(i == 0)
    def _():
        acc_ref[...] = jnp.zeros_like(acc_ref)

    p = preds_ref[0]                            # (C, P) native dtype (f32 / bf16)
    t = tgt_ref[0].astype(jnp.int32)            # (1, P) widened per-tile
    C, P = p.shape

    # Validity: not ignore_index AND inside the real pixel range.  Tail /
    # over-split tiles may read OOB garbage — select it out, never multiply.
    pix = jax.lax.broadcasted_iota(jnp.int32, (1, P), 1) + gtile * tile_pix
    valid = (t != ignore_index) & (pix < hw)                         # (1, P)

    # Softmax over the class (sublane) axis: max/sub in the input dtype
    # (bf16 stays packed on v6e/v7x), exp and everything after in f32.
    m = jnp.max(p, axis=0, keepdims=True)                            # (1, P)
    e = jnp.exp((p - m).astype(jnp.float32))                         # (C, P)
    denom = jnp.sum(e, axis=0, keepdims=True)                        # (1, P)
    sm = e * pl.reciprocal(denom, approx=False)

    zero = jnp.zeros_like(sm)
    masked_sm = jnp.where(valid, sm, zero)                           # softmax * mask
    cls = jax.lax.broadcasted_iota(jnp.int32, (C, P), 0)
    onehot = cls == jnp.maximum(t, 0)                                # (C, P) bool
    inter = jnp.where(onehot, masked_sm, zero)                       # sm * onehot * mask
    oh = jnp.where(onehot & valid, 1.0, 0.0)                         # onehot * mask

    # Lane-fold each term to (C, 1) and accumulate into the tiny scratch.
    acc_ref[0] += jnp.sum(inter, axis=-1, keepdims=True)
    acc_ref[1] += jnp.sum(masked_sm, axis=-1, keepdims=True)
    acc_ref[2] += jnp.sum(oh, axis=-1, keepdims=True)

    @pl.when(i == pl.num_programs(2) - 1)
    def _():
        out_ref[0] = acc_ref[...]


def dice_loss(preds, targets, *, ignore_index=255, smooth=1.0):
    """preds: (B, C, H, W) float (f32 or bf16); targets: (B, H, W) int.

    Returns the scalar dice loss (float32), matching PyTorch DiceLoss.forward.
    Note: target values in [C, ignore_index) silently match no class (PyTorch
    one_hot would raise); ignore_index pixels are masked out as in the spec.
    """
    B, C, H, W = preds.shape
    HW = H * W

    # Native class-major layout: pure reshapes, no transpose / pad / copy.
    preds_r = preds.reshape(B, C, HW)
    if (not jnp.issubdtype(targets.dtype, jnp.integer)) or targets.dtype.itemsize > 4:
        targets = targets.astype(jnp.int32)     # only widen when unavoidable
    tgt_r = targets.reshape(B, 1, HW)

    p_item = preds_r.dtype.itemsize
    t_item = tgt_r.dtype.itemsize

    # --- pixel-tile sizing: ~2 MiB of preds per grid step, capped by a
    #     double-buffered VMEM budget that also fits v7x (64 MiB physical). ---
    target_stream = 2 << 20
    vmem_input_budget = 24 << 20
    tp = max(128, (target_stream // (C * p_item)) // 128 * 128)
    per_pix_vmem = 2 * (C * p_item + t_item)     # double-buffered bytes / pixel
    tp_cap = max(128, (vmem_input_budget // per_pix_vmem) // 128 * 128)
    tp = min(tp, tp_cap)
    tile_pix = HW if HW <= tp else tp
    n_tiles = pl.cdiv(HW, tile_pix)

    # --- split the pixel-tile axis over two cores when the batch axis alone
    #     can't feed a v7x megacore (B == 1 or odd). No effect on v5e/v6e. ---
    n_split = 2 if (B % 2 == 1 and n_tiles >= 2) else 1
    tiles_per_split = pl.cdiv(n_tiles, n_split)

    vmem_bytes = 2 * tile_pix * (C * p_item + t_item) + (1 << 20)
    vmem_limit = int(min(40 << 20, max(16 << 20, vmem_bytes + (4 << 20))))

    def in_map(s, b, i):
        # Clamp the global tile so over-split tiles stay in-bounds; their
        # contribution is zeroed in-kernel via the pix < hw mask.
        return (b, 0, jnp.minimum(s * tiles_per_split + i, n_tiles - 1))

    sums = pl.pallas_call(
        partial(_dice_sums_kernel, ignore_index=ignore_index, hw=HW,
                tile_pix=tile_pix, tiles_per_split=tiles_per_split),
        out_shape=jax.ShapeDtypeStruct((n_split * B, 3, C, 1), jnp.float32),
        grid_spec=pltpu.PrefetchScalarGridSpec(
            num_scalar_prefetch=0,
            grid=(n_split, B, tiles_per_split),
            in_specs=[
                pl.BlockSpec((1, C, tile_pix), in_map),
                pl.BlockSpec((1, 1, tile_pix), in_map),
            ],
            out_specs=pl.BlockSpec((1, 3, C, 1),
                                   lambda s, b, i: (s * B + b, 0, 0, 0)),
            scratch_shapes=[pltpu.VMEM((3, C, 1), jnp.float32)],
        ),
        compiler_params=pltpu.CompilerParams(
            dimension_semantics=("parallel", "parallel", "arbitrary"),
            vmem_limit_bytes=vmem_limit),
    )(preds_r, tgt_r)

    per_class = jnp.sum(sums[..., 0], axis=0)    # (3, C): combine all partials
    intersection = per_class[0]
    union = per_class[1] + per_class[2]
    dice = (2.0 * intersection + smooth) / (union + smooth)
    return 1.0 - jnp.mean(dice)


def _dice_loss_ref(preds, targets, ignore_index=255, smooth=1.0):
    """Plain-JAX reference mirroring the PyTorch forward."""
    C = preds.shape[1]
    onehot = jax.nn.one_hot(jnp.maximum(targets, 0), C, dtype=jnp.float32)
    onehot = jnp.transpose(onehot, (0, 3, 1, 2))                     # (B,C,H,W)
    mask = (targets != ignore_index).astype(jnp.float32)[:, None]    # (B,1,H,W)
    sm = jax.nn.softmax(preds.astype(jnp.float32), axis=1) * mask
    onehot = onehot * mask
    inter = jnp.sum(sm * onehot, axis=(0, 2, 3))
    union = jnp.sum(sm, axis=(0, 2, 3)) + jnp.sum(onehot, axis=(0, 2, 3))
    dice = (2.0 * inter + smooth) / (union + smooth)
    return 1.0 - jnp.mean(dice)


if __name__ == "__main__":
    key = jax.random.PRNGKey(0)
    B, C, H, W = 2, 4, 16, 16
    k1, k2, k3 = jax.random.split(key, 3)

    preds = jax.random.normal(k1, (B, C, H, W), dtype=jnp.float32)
    targets = jax.random.randint(k2, (B, H, W), 0, C, dtype=jnp.int32)
    # Sprinkle a few ignore_index pixels.
    ignore_mask = jax.random.uniform(k3, (B, H, W)) < 0.1
    targets = jnp.where(ignore_mask, 255, targets)

    loss = dice_loss(preds, targets, ignore_index=255, smooth=1.0)
    jax.block_until_ready(loss)

    ref = _dice_loss_ref(preds, targets)
    assert jnp.allclose(loss, ref, atol=1e-5, rtol=1e-5), (loss, ref)

    print("KERNEL_OK")
</pallas_src>

<mosaic_0001>
module attributes {stable_mosaic.version = 11 : i64} {
  func.func @_dice_sums_kernel(%arg0: i32, %arg1: i32, %arg2: i32, %arg3: memref<1x4x256xf32, #tpu.memory_space<vmem>>, %arg4: memref<1x1x256xi32, #tpu.memory_space<vmem>>, %arg5: memref<1x3x4x1xf32, #tpu.memory_space<vmem>>, %arg6: memref<3x4x1xf32, #tpu.memory_space<vmem>>) attributes {dimension_semantics = [#tpu.dimension_semantics<parallel>, #tpu.dimension_semantics<parallel>, #tpu.dimension_semantics<arbitrary>], iteration_bounds = array<i64: 1, 2, 1>, scalar_prefetch = 0 : i64, scratch_operands = 1 : i64, tpu.core_type = #tpu.core_type<tc>, window_params = [{transform_indices = @transform_0, window_bounds = array<i64: 1, 4, 256>}, {transform_indices = @transform_1, window_bounds = array<i64: 1, 1, 256>}, {transform_indices = @transform_2, window_bounds = array<i64: 1, 3, 4, 1>}]} {
    %c1_i32 = arith.constant 1 : i32
    %0 = arith.muli %arg0, %c1_i32 : i32
    %1 = arith.addi %0, %arg2 : i32
    %c0_i32 = arith.constant 0 : i32
    %2 = arith.cmpi eq, %arg2, %c0_i32 : i32
    %3 = arith.extui %2 : i1 to i32
    %c0_i32_0 = arith.constant 0 : i32
    %4 = arith.cmpi ne, %3, %c0_i32_0 : i32
    scf.if %4 {
      %cst_33 = arith.constant 0.000000e+00 : f32
      %70 = vector.broadcast %cst_33 : f32 to vector<3x4x1xf32>
      %c0_34 = arith.constant 0 : index
      %c0_35 = arith.constant 0 : index
      %c0_36 = arith.constant 0 : index
      %71 = vector.load %arg6[%c0_34, %c0_35, %c0_36] : memref<3x4x1xf32, #tpu.memory_space<vmem>>, vector<3x4x1xf32>
      tpu.vector_store %arg6[%c0_34, %c0_35, %c0_36], %70 {strides = array<i32>} : memref<3x4x1xf32, #tpu.memory_space<vmem>>, vector<3x4x1xf32>,
    } else {
    }
    %c0 = arith.constant 0 : index
    %c0_1 = arith.constant 0 : index
    %c0_2 = arith.constant 0 : index
    %5 = vector.load %arg3[%c0, %c0_1, %c0_2] : memref<1x4x256xf32, #tpu.memory_space<vmem>>, vector<1x4x256xf32>
    %6 = vector.shape_cast %5 : vector<1x4x256xf32> to vector<4x256xf32>
    %c0_3 = arith.constant 0 : index
    %c0_4 = arith.constant 0 : index
    %c0_5 = arith.constant 0 : index
    %7 = vector.load %arg4[%c0_3, %c0_4, %c0_5] : memref<1x1x256xi32, #tpu.memory_space<vmem>>, vector<1x1x256xi32>
    %8 = vector.shape_cast %7 : vector<1x1x256xi32> to vector<1x256xi32>
    %9 = tpu.iota {dimensions = array<i32: 1>} : vector<1x256xi32>
    %c256_i32 = arith.constant 256 : i32
    %10 = arith.muli %1, %c256_i32 : i32
    %11 = vector.broadcast %10 : i32 to vector<1x256xi32>
    %12 = arith.addi %9, %11 : vector<1x256xi32>
    %c255_i32 = arith.constant 255 : i32
    %13 = vector.broadcast %c255_i32 : i32 to vector<1x256xi32>
    %14 = arith.cmpi ne, %8, %13 : vector<1x256xi32>
    %c256_i32_6 = arith.constant 256 : i32
    %15 = vector.broadcast %c256_i32_6 : i32 to vector<1x256xi32>
    %16 = arith.cmpi slt, %12, %15 : vector<1x256xi32>
    %17 = arith.andi %14, %16 : vector<1x256xi1>
    %cst = arith.constant dense<0xFF800000> : vector<256xf32>
    %18 = vector.multi_reduction <maximumf>, %6, %cst [0] : vector<4x256xf32> to vector<256xf32>
    %19 = vector.shape_cast %18 : vector<256xf32> to vector<1x256xf32>
    %20 = vector.broadcast %19 : vector<1x256xf32> to vector<4x256xf32>
    %21 = arith.subf %6, %20 : vector<4x256xf32>
    %22 = math.exp %21 : vector<4x256xf32>
    %cst_7 = arith.constant dense<0.000000e+00> : vector<256xf32>
    %23 = vector.multi_reduction <add>, %22, %cst_7 [0] : vector<4x256xf32> to vector<256xf32>
    %24 = vector.shape_cast %23 : vector<256xf32> to vector<1x256xf32>
    %25 = tpu.reciprocal %24 : vector<1x256xf32> -> vector<1x256xf32>
    %26 = vector.broadcast %25 : vector<1x256xf32> to vector<4x256xf32>
    %27 = arith.mulf %22, %26 : vector<4x256xf32>
    %cst_8 = arith.constant 0.000000e+00 : f32
    %28 = vector.broadcast %cst_8 : f32 to vector<4x256xf32>
    %29 = vector.shape_cast %17 : vector<1x256xi1> to vector<1x256xi1>
    %30 = vector.broadcast %29 : vector<1x256xi1> to vector<4x256xi1>
    %31 = arith.select %30, %27, %28 : vector<4x256xi1>, vector<4x256xf32>
    %32 = tpu.iota {dimensions = array<i32: 0>} : vector<4x256xi32>
    %c0_i32_9 = arith.constant 0 : i32
    %33 = vector.broadcast %c0_i32_9 : i32 to vector<1x256xi32>
    %34 = arith.maxsi %8, %33 : vector<1x256xi32>
    %35 = vector.broadcast %34 : vector<1x256xi32> to vector<4x256xi32>
    %36 = arith.cmpi eq, %32, %35 : vector<4x256xi32>
    %37 = arith.select %36, %31, %28 : vector<4x256xi1>, vector<4x256xf32>
    %38 = vector.broadcast %17 : vector<1x256xi1> to vector<4x256xi1>
    %39 = arith.andi %36, %38 : vector<4x256xi1>
    %cst_10 = arith.constant 1.000000e+00 : f32
    %cst_11 = arith.constant 0.000000e+00 : f32
    %40 = vector.broadcast %cst_10 : f32 to vector<4x256xf32>
    %41 = vector.broadcast %cst_11 : f32 to vector<4x256xf32>
    %42 = arith.select %39, %40, %41 : vector<4x256xi1>, vector<4x256xf32>
    %c0_12 = arith.constant 0 : index
    %c0_13 = arith.constant 0 : index
    %c0_14 = arith.constant 0 : index
    %43 = vector.load %arg6[%c0_12, %c0_13, %c0_14] : memref<3x4x1xf32, #tpu.memory_space<vmem>>, vector<1x4x1xf32>
    %44 = vector.shape_cast %43 : vector<1x4x1xf32> to vector<4x1xf32>
    %cst_15 = arith.constant dense<0.000000e+00> : vector<4xf32>
    %45 = vector.multi_reduction <add>, %37, %cst_15 [1] : vector<4x256xf32> to vector<4xf32>
    %46 = vector.shape_cast %45 : vector<4xf32> to vector<4x1xf32>
    %47 = arith.addf %44, %46 : vector<4x1xf32>
    %c0_16 = arith.constant 0 : index
    %c0_17 = arith.constant 0 : index
    %c0_18 = arith.constant 0 : index
    %48 = vector.load %arg6[%c0_16, %c0_17, %c0_18] : memref<3x4x1xf32, #tpu.memory_space<vmem>>, vector<1x4x1xf32>
    %49 = vector.shape_cast %48 : vector<1x4x1xf32> to vector<4x1xf32>
    %50 = vector.shape_cast %47 : vector<4x1xf32> to vector<1x4x1xf32>
    tpu.vector_store %arg6[%c0_16, %c0_17, %c0_18], %50 {strides = array<i32>} : memref<3x4x1xf32, #tpu.memory_space<vmem>>, vector<1x4x1xf32>,
    %c1 = arith.constant 1 : index
    %c0_19 = arith.constant 0 : index
    %c0_20 = arith.constant 0 : index
    %51 = vector.load %arg6[%c1, %c0_19, %c0_20] : memref<3x4x1xf32, #tpu.memory_space<vmem>>, vector<1x4x1xf32>
    %52 = vector.shape_cast %51 : vector<1x4x1xf32> to vector<4x1xf32>
    %cst_21 = arith.constant dense<0.000000e+00> : vector<4xf32>
    %53 = vector.multi_reduction <add>, %31, %cst_21 [1] : vector<4x256xf32> to vector<4xf32>
    %54 = vector.shape_cast %53 : vector<4xf32> to vector<4x1xf32>
    %55 = arith.addf %52, %54 : vector<4x1xf32>
    %c1_22 = arith.constant 1 : index
    %c0_23 = arith.constant 0 : index
    %c0_24 = arith.constant 0 : index
    %56 = vector.load %arg6[%c1_22, %c0_23, %c0_24] : memref<3x4x1xf32, #tpu.memory_space<vmem>>, vector<1x4x1xf32>
    %57 = vector.shape_cast %56 : vector<1x4x1xf32> to vector<4x1xf32>
    %58 = vector.shape_cast %55 : vector<4x1xf32> to vector<1x4x1xf32>
    tpu.vector_store %arg6[%c1_22, %c0_23, %c0_24], %58 {strides = array<i32>} : memref<3x4x1xf32, #tpu.memory_space<vmem>>, vector<1x4x1xf32>,
    %c2 = arith.constant 2 : index
    %c0_25 = arith.constant 0 : index
    %c0_26 = arith.constant 0 : index
    %59 = vector.load %arg6[%c2, %c0_25, %c0_26] : memref<3x4x1xf32, #tpu.memory_space<vmem>>, vector<1x4x1xf32>
    %60 = vector.shape_cast %59 : vector<1x4x1xf32> to vector<4x1xf32>
    %cst_27 = arith.constant dense<0.000000e+00> : vector<4xf32>
    %61 = vector.multi_reduction <add>, %42, %cst_27 [1] : vector<4x256xf32> to vector<4xf32>
    %62 = vector.shape_cast %61 : vector<4xf32> to vector<4x1xf32>
    %63 = arith.addf %60, %62 : vector<4x1xf32>
    %c2_28 = arith.constant 2 : index
    %c0_29 = arith.constant 0 : index
    %c0_30 = arith.constant 0 : index
    %64 = vector.load %arg6[%c2_28, %c0_29, %c0_30] : memref<3x4x1xf32, #tpu.memory_space<vmem>>, vector<1x4x1xf32>
    %65 = vector.shape_cast %64 : vector<1x4x1xf32> to vector<4x1xf32>
    %66 = vector.shape_cast %63 : vector<4x1xf32> to vector<1x4x1xf32>
    tpu.vector_store %arg6[%c2_28, %c0_29, %c0_30], %66 {strides = array<i32>} : memref<3x4x1xf32, #tpu.memory_space<vmem>>, vector<1x4x1xf32>,
    %c0_i32_31 = arith.constant 0 : i32
    %67 = arith.cmpi eq, %arg2, %c0_i32_31 : i32
    %68 = arith.extui %67 : i1 to i32
    %c0_i32_32 = arith.constant 0 : i32
    %69 = arith.cmpi ne, %68, %c0_i32_32 : i32
    scf.if %69 {
      %c0_33 = arith.constant 0 : index
      %c0_34 = arith.constant 0 : index
      %c0_35 = arith.constant 0 : index
      %70 = vector.load %arg6[%c0_33, %c0_34, %c0_35] : memref<3x4x1xf32, #tpu.memory_space<vmem>>, vector<3x4x1xf32>
      %c0_36 = arith.constant 0 : index
      %c0_37 = arith.constant 0 : index
      %c0_38 = arith.constant 0 : index
      %c0_39 = arith.constant 0 : index
      %71 = vector.load %arg5[%c0_36, %c0_37, %c0_38, %c0_39] : memref<1x3x4x1xf32, #tpu.memory_space<vmem>>, vector<1x3x4x1xf32>
      %72 = vector.shape_cast %71 : vector<1x3x4x1xf32> to vector<3x4x1xf32>
      %73 = vector.shape_cast %70 : vector<3x4x1xf32> to vector<1x3x4x1xf32>
      tpu.vector_store %arg5[%c0_36, %c0_37, %c0_38, %c0_39], %73 {strides = array<i32>} : memref<1x3x4x1xf32, #tpu.memory_space<vmem>>, vector<1x3x4x1xf32>,
    } else {
    }
    return
  }
  func.func @transform_0(%arg0: i32, %arg1: i32, %arg2: i32) -> (i32, i32, i32) {
    %c1_i32 = arith.constant 1 : i32
    %0 = arith.muli %arg0, %c1_i32 : i32
    %1 = arith.addi %0, %arg2 : i32
    %c0_i32 = arith.constant 0 : i32
    %2 = arith.minsi %1, %c0_i32 : i32
    %c0_i32_0 = arith.constant 0 : i32
    %c0_i32_1 = arith.constant 0 : i32
    return %arg1, %c0_i32_0, %2 : i32, i32, i32
  }
  func.func @transform_1(%arg0: i32, %arg1: i32, %arg2: i32) -> (i32, i32, i32) {
    %c1_i32 = arith.constant 1 : i32
    %0 = arith.muli %arg0, %c1_i32 : i32
    %1 = arith.addi %0, %arg2 : i32
    %c0_i32 = arith.constant 0 : i32
    %2 = arith.minsi %1, %c0_i32 : i32
    %c0_i32_0 = arith.constant 0 : i32
    %c0_i32_1 = arith.constant 0 : i32
    return %arg1, %c0_i32_0, %2 : i32, i32, i32
  }
  func.func @transform_2(%arg0: i32, %arg1: i32, %arg2: i32) -> (i32, i32, i32, i32) {
    %c2_i32 = arith.constant 2 : i32
    %0 = arith.muli %arg0, %c2_i32 : i32
    %1 = arith.addi %0, %arg1 : i32
    %c0_i32 = arith.constant 0 : i32
    %c0_i32_0 = arith.constant 0 : i32
    %c0_i32_1 = arith.constant 0 : i32
    %c0_i32_2 = arith.constant 0 : i32
    return %1, %c0_i32, %c0_i32_0, %c0_i32_1 : i32, i32, i32, i32
  }
}

</mosaic_0001>

<bundles_post_ra>
// kernel: tpu_custom_call.1
= control target key start
LH: loop header
LB: loop body
LE: loop exit
PB: predicated region body
PF: predicated region fallthrough
CT: control target
= control target key end

     0   :  { %7 = vsyncpa [#allocation4], 0  ;;  %s968_s0 = inlined_call_operand.hbm [shape: f32[2,4,256], index: 0, kind: input, shape index: {}]   ;;  %s969_s1 = inlined_call_operand.hbm [shape: s32[2,1,256], index: 1, kind: input, shape index: {}]   ;;  %s970_s2 = inlined_call_operand.vmem [shape: f32[2,3,4,1], index: 2, kind: output, shape index: {}]  }
   0x1   :  { %9 = vsyncpa [#allocation4 + $0x1], 0 }
   0x2   :  { %10 = vsyncpa [#allocation6], 0 }
   0x3   :  { %12 = vsyncpa [#allocation6 + $0x1], 0  ;;  %s764_s9 = smov 0   ;;  %s766_s10 = smov 0  }
   0x4   :  { %s768_s11 = smov 0   ;;  %s770_s12 = smov 0  }
   0x5   :  { %s772_s13 = smov 0   ;;  %s774_s14 = smov 0  }
   0x6 LB: > { %s537_s15 = sadd.s32 4294967295, %s741_s14   ;;  %s33_s16 = sadd.s32 1, %s737_s13  ;;  %s741_s14 = sphi %s774_s14, %s18_s14   ;;  %s737_s13 = sphi %s772_s13, %s984_s13   ;;  %s733_s12 = sphi %s770_s12, %s983_s12   ;;  %s729_s11 = sphi %s768_s11, %s982_s11   ;;  %s725_s10 = sphi %s766_s10, %s981_s10   ;;  %s721_s9 = sphi %s764_s9, %s980_s9  }
   0x7   : > { %p35_p0 = scmp.ge.s32.totalorder %s33_s16, 2  ;;  %s52_s17 = sadd.s32 1, %s729_s11 }
   0x8   : > { %p59_p1 = scmp.ne.s32.totalorder %s729_s11, %s725_s10  ;;  %p60_p2 = scmp.eq.s32.totalorder %s741_s14, 0 }
   0x9   : > { %s986_s16 = smov (%p35_p0, %s33_s16), 0  ;;  %p65_p4 = scmp.ne.s32.totalorder %s725_s10, %s721_s9 }
   0xa   : > { %p800_p3 = por %p60_p2, %p59_p1  ;;  %s47_s19 = ssub.s32 %s737_s13, %s986_s16 }
   0xb   : > { %p66_p5 = scmp.eq.s32.totalorder %s537_s15, 0  ;;  %p50_p6 = scmp.eq.s32.totalorder %s47_s19, 0 }
   0xc   : > { %p567_p8 = scmp.lt.s32.totalorder %s741_s14, 2  ;;  %s816_s22 = sand.u32 1, %s729_s11  }
   0xd   : > { %p807_p7 = por %p66_p5, %p65_p4  ;;  %s553_s23 = sshll.u32 %s737_s13, 7 }
   0xe   : > { %s813_s21 = scalar_select %p50_p6, %s729_s11, %s52_s17  }
   0xf   : > { %s973_s20 = scalar_select %p807_p7, 1, 0 }
  0x10   : > { %s541_s24 = sshll.u32 %s816_s22, 3  ;;  %s823_s27 = scalar_lea.hbm %s968_s0, %s553_s23 }
  0x11   : > { %s157_s28 = scalar_lea.vmem [#allocation3], %s541_s24  ;;  %p827_p9 = pnand %p567_p8, %p800_p3 }
  0x12   : > { %s170_s29 = sshll.u32 %s157_s28, 4  ;;  %s154_s3 = scalar_lea.sflag [#allocation4], %s816_s22  ;;  %s831_s29 = int_to_ptr.vmem [resolvable:$true] %s170_s29 }
  0x13   : > { %s627_s4 = scalar_lea.hbm %s823_s27, 128  ;;  %p629_p13 = pneg %p827_p9 }
  0x14   : > { %p628_p12 = scmp.ne.s32.totalorder %s823_s27, %s627_s4  ;;  %s632_s7 = scalar_lea.hbm %s968_s0, 256 }
  0x15   : > { %p633_p2 = scmp.lt.u32.totalorder %s823_s27, %s968_s0  ;;  %p634_p3 = scmp.lt.u32.totalorder %s632_s7, %s627_s4 }
  0x16   : > { %p630_p0 = pnand %p629_p13, %p628_p12  ;;  %p636_p5 = scmp.lt.u32.totalorder %s627_s4, %s823_s27 }
  0x17   : > { %p635_p4 = por %p634_p3, %p633_p2 }
  0x18   : > { %p631_p1 = pneg %p630_p0 }
  0x19   : > { %p637_p6 = por %p636_p5, %p635_p4 }
  0x1b   : > { %p638_p8 = pnand %p637_p6, %p631_p1 }
  0x1d   : > { %641 = shalt.err (!%p638_p8)
}
  0x1e   : > { %s642_s15 = scalar_lea.vmem %s831_s29, 128  ;;  %s743_s17 = smov [#allocation3]  }
  0x1f   : > { %p643_p12 = scmp.ne.s32.totalorder %s831_s29, %s642_s15  ;;  %s647_s18 = sshll.u32 %s743_s17, 4  ;;  %s648_s18 = int_to_ptr.vmem [resolvable:$false] %s647_s18 }
  0x20   : > { %s649_s19 = scalar_lea.vmem %s648_s18, 256  ;;  %p650_p11 = scmp.lt.s32.totalorder %s831_s29, %s648_s18 }
  0x21   : > { %p645_p0 = pnand %p643_p12, %p629_p13  ;;  %p651_p2 = scmp.lt.s32.totalorder %s649_s19, %s642_s15 }
  0x23   : > { %p646_p10 = pneg %p645_p0  ;;  %p652_p3 = por %p651_p2, %p650_p11 }
  0x25   : > { %p653_p4 = pnand %p652_p3, %p646_p10 }
  0x27   : > { %656 = shalt.err (!%p653_p4)
}
  0x28   : > { %563 = dma.hbm_to_vmem [thread:$0]  (!%p827_p9), %s823_s27, 128, %s831_s29, %s154_s3  }
  0x29   : > { %p975_p1 = scmp.lt.s32.totalorder %s741_s14, 3  ;;  %p976_p5 = scmp.ge.s32.totalorder %s741_s14, 1 }
  0x2a   : > { %s544_s24 = sshll.u32 %s816_s22, 1  ;;  %s554_s25 = sshll.u32 %s737_s13, 5 }
  0x2b   : > { %p865_p6 = pnand %p976_p5, %p975_p1  ;;  %s874_s4 = scalar_lea.hbm %s969_s1, %s554_s25 }
  0x2c   : > { %s181_s5 = scalar_lea.vmem [#allocation5], %s544_s24  ;;  %s178_s27 = scalar_lea.sflag [#allocation6], %s816_s22 }
  0x2d   : > { %s977_s23 = scalar_select %p865_p6, 1, 0 }
  0x2e   : > { %s194_s6 = sshll.u32 %s181_s5, 4  ;;  %s657_s29 = scalar_lea.hbm %s874_s4, 32  ;;  %s195_s6 = int_to_ptr.vmem [resolvable:$true] %s194_s6 }
  0x2f   : > { %p658_p10 = scmp.ne.s32.totalorder %s874_s4, %s657_s29  ;;  %s662_s8 = scalar_lea.hbm %s969_s1, 64 }
  0x30   : > { %p663_p12 = scmp.lt.u32.totalorder %s874_s4, %s969_s1  ;;  %p664_p0 = scmp.lt.u32.totalorder %s662_s8, %s657_s29 }
  0x31   : > { %p660_p11 = pnand %p658_p10, %p629_p13  ;;  %p666_p3 = scmp.lt.u32.totalorder %s657_s29, %s874_s4 }
  0x32   : > { %p665_p2 = por %p664_p0, %p663_p12 }
  0x33   : > { %p661_p8 = pneg %p660_p11 }
  0x34   : > { %p667_p4 = por %p666_p3, %p665_p2 }
  0x36   : > { %p668_p1 = pnand %p667_p4, %p661_p8 }
  0x38   : > { %671 = shalt.err (!%p668_p1)
}
  0x39   : > { %s672_s22 = scalar_lea.vmem %s195_s6, 32  ;;  %s744_s17 = smov [#allocation5]  }
  0x3a   : > { %p673_p5 = scmp.ne.s32.totalorder %s195_s6, %s672_s22  ;;  %s677_s18 = sshll.u32 %s744_s17, 4  ;;  %s678_s18 = int_to_ptr.vmem [resolvable:$false] %s677_s18 }
  0x3b   : > { %s679_s19 = scalar_lea.vmem %s678_s18, 64  ;;  %p680_p7 = scmp.lt.s32.totalorder %s195_s6, %s678_s18 }
  0x3c   : > { %p675_p10 = pnand %p673_p5, %p629_p13  ;;  %p681_p6 = scmp.lt.s32.totalorder %s679_s19, %s672_s22 }
  0x3e   : > { %p676_p11 = pneg %p675_p10  ;;  %p682_p0 = por %p681_p6, %p680_p7 }
  0x40   : > { %p683_p12 = pnand %p682_p0, %p676_p11 }
  0x42   : > { %686 = shalt.err (!%p683_p12)
}
  0x43   : > { %566 = dma.hbm_to_vmem [thread:$0]  (!%p827_p9), %s874_s4, 32, %s195_s6, %s178_s27  }
  0x44   : > { %p978_p8 = scmp.ne.s32.totalorder %s977_s23, 0 }
  0x45   : > { %s205_s24 = sand.u32 (!%p978_p8), 1, %s725_s10   ;;  %p979_p13 = scmp.ne.s32.totalorder (!%p978_p8), %s973_s20, 0 }
  0x46   : > { %203 = sbr.rel (%p978_p8) target bundleno = 309 (0x135), region = 28  ;;  %s548_s25 = sshll.u32 (!%p978_p8), %s205_s24, 3 }
  0x47   : > { %s206_s26 = scalar_lea.sflag (!%p978_p8), [#allocation4], %s205_s24  ;;  %s209_s28 = scalar_lea.vmem (!%p978_p8), [#allocation3], %s548_s25 }
  0x4d   : > { %712 = dma.done.wait (%p979_p13), %s206_s26, 128  }
  0x4e   : > { %714 = vsyncadd (%p979_p13), %s206_s26, 4294967168  ;;  %s549_s5 = sshll.u32 %s205_s24, 1  ;;  %s215_s29 = scalar_lea.sflag [#allocation6], %s205_s24 }
  0x4f   : > { %s218_s30 = scalar_lea.vmem [#allocation5], %s549_s5 }
  0x50   : > { %716 = dma.done.wait (%p979_p13), %s215_s29, 32  }
  0x51   : > { %718 = vsyncadd (%p979_p13), %s215_s29, 4294967264  ;;  %v290_v0 = vlaneseq  ;;  %v745_v1 = vmov 1966171168   ;;  %vm268_vm0 = vcmask 3072   ;;  %v746_v4 = vmov 1   ;;  %v272_v9 = vld [vmem:[%s209_s28] sm:$0xff] }
  0x52   : > { %v288_v2 = vunpack.c.l.s4 %v745_v1  ;;  %v286_v5 = vcombine.low %v746_v4, %v746_v4  ;;  %v747_v7 = vmov 0.0   ;;  %vm306_vm1 = vcmask 1043456   ;;  %v273_v10 = vld [vmem:[%s218_s30] sm:$0x3]  ;;  %p256_p7 = scmp.lt.s32.totalorder %s733_s12, 1 }
  0x53   : > { %v907_v3 = vshrl.u32 %v290_v0, 7  ;;  %269 = vst.msk [vmem:[#allocation2] sm:$0xf] %vm268_vm0, %v747_v7  ;;  %270 = vst.msk [vmem:[#allocation2 + $0x4] sm:$0xf] %vm268_vm0, %v747_v7  ;;  %v304_v13 = vcombine.high %v272_v9, %v272_v9  ;;  %v307_v14 = vsel %vm306_vm1, %v272_v9, -inf }
  0x54   : > { %v289_v6 = vunpack.c.0.s8 %v288_v2  ;;  %271 = vst.msk [vmem:[#allocation2 + $0x8] sm:$0xf] %vm268_vm0, %v747_v7  ;;  %vm370_vm2 = vcmp.gt.s32.totalorder %v273_v10, 0  ;;  %vm281_vm3 = vcmp.ne.s32.totalorder %v273_v10, 255  ;;  %v308_v17 = vrot.slane %v307_v14, 4  ;;  %s988_s12 = smov (!%p256_p7, %s733_s12), 1 }
  0x55   : > { %v355_v12 = vsub.s32 0, %v907_v3  ;;  %v359_v15 = vsub.s32 1, %v907_v3  ;;  %v371_v18 = vsel %vm370_vm2, %v273_v10, 0  ;;  %v314_v19 = vsel %vm306_vm1, %v304_v13, -inf  ;;  %s555_s20 = smul.u32 12, %s988_s12 }
  0x56   : > { %v292_v8 = vsub.s32 %v289_v6, %v907_v3  ;;  %v309_v20 = vmax.f32 %v307_v14, %v308_v17  ;;  %v315_v21 = vrot.slane %v314_v19, 4  ;;  %v748_v25 = vmov 0  }
  0x57   : > { %v375_v22 = vrot.slane %v371_v18, %v355_v12  ;;  %v379_v27 = vrot.slane %v371_v18, %v359_v15  ;;  %s260_s6 = scalar_lea.vmem %s970_s2, %s555_s20 }
  0x58   : > { %v293_v11 = vrot.slane %v286_v5, %v292_v8  ;;  %v310_v23 = vrot.slane %v309_v20, 2  ;;  %v316_v24 = vmax.f32 %v314_v19, %v315_v21 }
  0x59   : > { %vm380_vm7 = vcmp.eq.s32.totalorder %v907_v3, %v375_v22  ;;  %vm381_vm9 = vcmp.eq.s32.totalorder %v907_v3, %v379_v27 }
  0x5a   : > { %v300_v16 = vrot.slane %v293_v11, %v292_v8  ;;  %v311_v30 = vmax.f32 %v309_v20, %v310_v23  ;;  %v317_v31 = vrot.slane %v316_v24, 2  ;;  %v398_v19 = vld [vmem:[#allocation2 + $0x4] sm:$0xf] }
  0x5b   : > { %v407_v13 = vld [vmem:[#allocation2 + $0x8] sm:$0xf] }
  0x5c   : > { %vm301_vm4 = vcmp.ne.s32.totalorder %v300_v16, 0  ;;  %v312_v32 = vrot.slane %v311_v30, 1  ;;  %v318_v33 = vmax.f32 %v316_v24, %v317_v31  ;;  %v388_v16 = vld [vmem:[#allocation2] sm:$0xf] }
  0x5d   : > { %vm302_vm5 = vmand %vm281_vm3, %vm301_vm4 }
  0x5e   : > { %v352_v26 = vsel %vm302_vm5, 1, %v748_v25  ;;  %v313_v35 = vmax.f32 %v311_v30, %v312_v32  ;;  %v319_v36 = vrot.slane %v318_v33, 1 }
  0x5f   : > { %v356_v28 = vrot.slane %v352_v26, %v355_v12  ;;  %v360_v29 = vrot.slane %v352_v26, %v359_v15 }
  0x60   : > { %v320_v40 = vmax.f32 %v318_v33, %v319_v36 }
  0x61   : > { %vm361_vm6 = vcmp.eq.s32.totalorder %v356_v28, 1  ;;  %vm362_vm8 = vcmp.eq.s32.totalorder %v360_v29, 1 }
  0x62   : > { %vm384_vm10 = vmand %vm380_vm7, %vm361_vm6  ;;  %v323_v42 = vcombine.low %v313_v35, %v320_v40 }
  0x63   : > { %vm385_vm11 = vmand %vm381_vm9, %vm362_vm8  ;;  %v386_v34 = vsel %vm384_vm10, 1.0, %v747_v7 }
  0x64   : > { %v387_v37 = vsel %vm385_vm11, 1.0, %v747_v7  ;;  %v408_v38 = vsel %vm306_vm1, %v386_v34, 0.0  ;;  %v325_v43 = vsub.f32 %v272_v9, %v323_v42 }
  0x65   : > { %v409_v39 = vsel %vm306_vm1, %v387_v37, 0.0 }
  0x66   : > { %v410_v41 = vadd.f32 %v409_v39, %v408_v38  ;;  %v326_v44 = vmul.f32 1.442695, %v325_v43 }
  0x68   : > { %411 = vadd.xlane.f32.xlu1 %v410_v41  ;;  %621 = vpow2.f32 %v326_v44 }
  0x72   : > { %v622_v45 = vpop.eup %621 }
  0x73   : > { %v329_v46 = vcombine.high %v622_v45, %v622_v45  ;;  %v331_v47 = vsel %vm306_vm1, %v622_v45, 0.0 }
  0x74   : > { %v332_v48 = vrot.slane %v331_v47, 4 }
  0x75   : > { %v338_v49 = vsel %vm306_vm1, %v329_v46, 0.0 }
  0x76   : > { %v333_v50 = vadd.f32 %v332_v48, %v331_v47  ;;  %v339_v51 = vrot.slane %v338_v49, 4 }
  0x78   : > { %v334_v52 = vrot.slane %v333_v50, 2  ;;  %v340_v53 = vadd.f32 %v339_v51, %v338_v49 }
  0x7a   : > { %v335_v54 = vadd.f32 %v334_v52, %v333_v50  ;;  %v341_v55 = vrot.slane %v340_v53, 2 }
  0x7c   : > { %v336_v56 = vrot.slane %v335_v54, 1  ;;  %v342_v57 = vadd.f32 %v341_v55, %v340_v53 }
  0x7e   : > { %v337_v58 = vadd.f32 %v336_v56, %v335_v54  ;;  %v343_v59 = vrot.slane %v342_v57, 1 }
  0x80   : > { %v344_v60 = vadd.f32 %v343_v59, %v342_v57  ;;  %623 = vrcp.f32 %v337_v58 }
  0x82   : > { %625 = vrcp.f32 %v344_v60 }
  0x8a   : > { %v624_v61 = vpop.eup %623 }
  0x8c   : > { %v626_v62 = vpop.eup %625 }
  0x8d   : > { %v349_v63 = vcombine.low %v624_v61, %v626_v62 }
  0x8f   : > { %v351_v0 = vmul.f32 %v622_v45, %v349_v63 }
  0x91   : > { %v364_v1 = vcombine.high %v351_v0, %v351_v0  ;;  %v366_v2 = vsel %vm361_vm6, %v351_v0, 0.0 }
  0x92   : > { %v382_v4 = vsel %vm380_vm7, %v366_v2, 0.0  ;;  %v399_v9 = vsel %vm306_vm1, %v366_v2, 0.0 }
  0x93   : > { %v367_v5 = vsel %vm362_vm8, %v364_v1, 0.0  ;;  %v389_v6 = vsel %vm306_vm1, %v382_v4, 0.0 }
  0x94   : > { %v383_v7 = vsel %vm381_vm9, %v367_v5, 0.0  ;;  %v400_v10 = vsel %vm306_vm1, %v367_v5, 0.0 }
  0x95   : > { %v390_v8 = vsel %vm306_vm1, %v383_v7, 0.0  ;;  %v401_v12 = vadd.f32 %v400_v10, %v399_v9 }
  0x96   : > { %v391_v11 = vadd.f32 %v390_v8, %v389_v6 }
  0x98   : > { %392 = vadd.xlane.f32.xlu0 %v391_v11 }
  0x9c   : > { %402 = vadd.xlane.f32.xlu0 %v401_v12 }
  0xf5   : > { %v412_v14 = vpop.xlane.xlu1 %411 }
  0xf6   : > { %v413_v15 = vadd.f32 %v412_v14, %v407_v13 }
  0xf8   : > { %414 = vst.msk [vmem:[#allocation2 + $0x8] sm:$0xf] %vm268_vm0, %v413_v15 }
  0xff   : > { %v420_v3 = vld [vmem:[#allocation2 + $0x8] sm:$0xf] }
 0x100   : > { %423 = vst.msk [vmem:[%s260_s6 + $0x8] sm:$0xf] %vm268_vm0, %v420_v3 }
 0x125   : > { %v393_v17 = vpop.xlane.xlu0 %392 }
 0x126   : > { %v394_v18 = vadd.f32 %v393_v17, %v388_v16 }
 0x128   : > { %396 = vst.msk [vmem:[#allocation2] sm:$0xf] %vm268_vm0, %v394_v18 }
 0x129   : > { %v403_v20 = vpop.xlane.xlu0 %402 }
 0x12a   : > { %v404_v21 = vadd.f32 %v403_v20, %v398_v19 }
 0x12c   : > { %405 = vst.msk [vmem:[#allocation2 + $0x4] sm:$0xf] %vm268_vm0, %v404_v21 }
 0x12f   : > { %v418_v22 = vld [vmem:[#allocation2] sm:$0xf] }
 0x130   : > { %421 = vst.msk [vmem:[%s260_s6] sm:$0xf] %vm268_vm0, %v418_v22 }
 0x133   : > { %v419_v23 = vld [vmem:[#allocation2 + $0x4] sm:$0xf] }
 0x134   : > { %422 = vst.msk [vmem:[%s260_s6 + $0x4] sm:$0xf] %vm268_vm0, %v419_v23 }
 0x135 PF: > { %s18_s14 = sadd.s32 1, %s741_s14   ;;  %s980_s9 = smov %s725_s10 }
 0x136   : > { %p15_p9 = scmp.ge.s32.totalorder %s18_s14, 4   ;;  %s981_s10 = smov %s729_s11 }
 0x137   : > { %s982_s11 = smov %s813_s21  ;;  %s983_s12 = smov %s737_s13 }
 0x138   : > { %s984_s13 = smov %s986_s16  ;;  %17 = sbr.rel (!%p15_p9) target bundleno = 6 (0x6), region = 91 }
 0x13f   :  { %451 = vsyncpa [#allocation4], 1 }
 0x140   :  { %453 = vsyncpa [#allocation4 + $0x1], 1 }
 0x141   :  { %454 = vsyncpa [#allocation6], 1 }
 0x142   :  { %456 = vsyncpa [#allocation6 + $0x1], 1 }

</bundles_post_ra>
